<compile_context>
chip_gen: v7x
topology: tpu7x:2x2x1
jax: 0.10.0
libtpu: 0.0.40
codegen_flags: <defaults>
</compile_context>

<pallas_src>
import functools

import jax
import jax.numpy as jnp
from jax.experimental import pallas as pl
from jax.experimental.pallas import tpu as pltpu

# Logical feature sizes of the torch module.
F0, F1, F2, F3 = 5, 8, 4, 12

LANE = 128          # vreg lane width: batch maps to lanes inside the kernel
_MiB = 1 << 20


def _round_up(n, m):
    return (n + m - 1) // m * m


def mlp_kernel(xt_ref, w1_ref, b1_ref, w2_ref, b2_ref, w3_ref, b3_ref, o_ref):
    """One batch tile, lane-dense layout: tensors are [features(sublanes), batch(lanes)].

    Weights are [out, in]; biases are [out, 1] and stay f32 regardless of the
    streaming dtype (MXU accumulation is f32 via preferred_element_type).
    """
    # Layer 1: Linear(5 -> 8) + ReLU
    h = jnp.dot(w1_ref[...], xt_ref[...], preferred_element_type=jnp.float32)
    h = jnp.maximum(h + b1_ref[...], 0.0)
    # Layer 2: Linear(8 -> 4) + ReLU
    h = jnp.dot(w2_ref[...], h.astype(w2_ref.dtype),
                preferred_element_type=jnp.float32)
    h = jnp.maximum(h + b2_ref[...], 0.0)
    # Layer 3: Linear(4 -> 12) + ReLU
    h = jnp.dot(w3_ref[...], h.astype(w3_ref.dtype),
                preferred_element_type=jnp.float32)
    h = jnp.maximum(h + b3_ref[...], 0.0)
    o_ref[...] = h.astype(o_ref.dtype)


def prepare_pallas_params(params):
    """One-time host-side prep: transpose to [out, in] / [out, 1].

    No sublane zero-padding anymore: every weight/bias block equals its full
    array shape (satisfies the (8,128) BlockSpec rule), and dropping the
    16->12 output / 8->5 input pads removes pure-zero HBM traffic.
    """
    return {
        "w1": params["w1"].T.astype(jnp.float32),               # [8, 5]
        "b1": params["b1"].reshape(-1, 1).astype(jnp.float32),  # [8, 1]
        "w2": params["w2"].T.astype(jnp.float32),               # [4, 8]
        "b2": params["b2"].reshape(-1, 1).astype(jnp.float32),  # [4, 1]
        "w3": params["w3"].T.astype(jnp.float32),               # [12, 4]
        "b3": params["b3"].reshape(-1, 1).astype(jnp.float32),  # [12, 1]
    }


def _choose_tiling(batch, batch_tile, in_itemsize, out_itemsize):
    """Pick the batch (lane) tile, padded batch, grid size, and optional VMEM limit."""
    padded_b = _round_up(max(batch, LANE), LANE)
    tile = min(_round_up(batch_tile, LANE), padded_b)

    # v7x megacore: keep >= 2 grid steps when the batch allows it so the
    # "parallel" batch axis gives both TensorCores work.
    if tile >= padded_b and padded_b >= 2 * LANE:
        tile = _round_up(padded_b // 2, LANE)

    # Per-step double-buffered streams the pipeline holds in VMEM: x in + out.
    def stream_bytes(t):
        return 2 * t * (F0 * in_itemsize + F3 * out_itemsize)

    # Hard cap so the kernel always fits comfortably (v7x: 64 MiB physical VMEM).
    while stream_bytes(tile) > 40 * _MiB and tile > LANE:
        tile = max(LANE, _round_up(tile // 2, LANE))

    padded_b = _round_up(padded_b, tile)
    grid = padded_b // tile

    # v5e's scoped-VMEM default is 16 MiB; raise it explicitly only when needed.
    need = stream_bytes(tile) + _MiB          # + weights/biases/headroom
    vmem_limit = min(need + 4 * _MiB, 48 * _MiB) if need > 12 * _MiB else None
    return tile, padded_b, grid, vmem_limit


def _run_mlp(xt, prepared, *, tile, grid, compute_dtype, out_dtype, vmem_limit):
    """xt: [5, padded_b] already in the transposed (lane-dense batch) layout."""
    padded_b = xt.shape[1]
    w1 = prepared["w1"].astype(compute_dtype)
    w2 = prepared["w2"].astype(compute_dtype)
    w3 = prepared["w3"].astype(compute_dtype)

    const = lambda i: (0, 0)   # weights/biases stay VMEM-resident across grid steps
    cp_kwargs = dict(dimension_semantics=("parallel",))
    if vmem_limit is not None:
        cp_kwargs["vmem_limit_bytes"] = int(vmem_limit)

    return pl.pallas_call(
        mlp_kernel,
        out_shape=jax.ShapeDtypeStruct((F3, padded_b), out_dtype),
        grid=(grid,),
        in_specs=[
            pl.BlockSpec((F0, tile), lambda i: (0, i)),   # x tiles stream through
            pl.BlockSpec((F1, F0), const),
            pl.BlockSpec((F1, 1), const),
            pl.BlockSpec((F2, F1), const),
            pl.BlockSpec((F2, 1), const),
            pl.BlockSpec((F3, F2), const),
            pl.BlockSpec((F3, 1), const),
        ],
        # NOTE: add pipeline_mode=pl.Buffered(3) on the x/out specs only if a
        # post-tile-growth profile shows exposed DMA (perf review item 8).
        out_specs=pl.BlockSpec((F3, tile), lambda i: (0, i)),
        compiler_params=pltpu.CompilerParams(**cp_kwargs),
    )(xt, w1, prepared["b1"], w2, prepared["b2"], w3, prepared["b3"])


@functools.partial(jax.jit, static_argnames=("batch_tile", "compute_dtype", "out_dtype"))
def simple_model_forward_pallas_t(xt, prepared, *, batch_tile=32768,
                                  compute_dtype=jnp.float32, out_dtype=None):
    """Transposed-layout entry point: xt is [5, batch], returns [12, batch].

    Callers that keep activations as [features, batch] through the surrounding
    model avoid both wrapper HBM transpose round trips (perf review item 7).
    """
    assert xt.shape[0] == F0, xt.shape
    batch = xt.shape[1]
    out_dtype = compute_dtype if out_dtype is None else out_dtype
    tile, padded_b, grid, vmem_limit = _choose_tiling(
        batch, batch_tile, jnp.dtype(compute_dtype).itemsize,
        jnp.dtype(out_dtype).itemsize)
    xt = jnp.pad(xt.astype(compute_dtype), ((0, 0), (0, padded_b - batch)))
    out_t = _run_mlp(xt, prepared, tile=tile, grid=grid,
                     compute_dtype=compute_dtype, out_dtype=out_dtype,
                     vmem_limit=vmem_limit)
    return out_t[:, :batch]


@functools.partial(jax.jit, static_argnames=("batch_tile", "compute_dtype", "out_dtype"))
def simple_model_forward_pallas(x, prepared, *, batch_tile=32768,
                                compute_dtype=jnp.float32, out_dtype=None):
    """Natural-layout entry point: x is [batch, 5], returns [batch, 12]."""
    batch = x.shape[0]
    out_dtype = compute_dtype if out_dtype is None else out_dtype
    tile, padded_b, grid, vmem_limit = _choose_tiling(
        batch, batch_tile, jnp.dtype(compute_dtype).itemsize,
        jnp.dtype(out_dtype).itemsize)
    # TODO(synk): plumb the [features, batch] layout through the surrounding
    # model (use simple_model_forward_pallas_t) to remove these two HBM
    # transpose round trips, which dominate once tiles are large.
    xt = jnp.pad(x.astype(compute_dtype).T, ((0, 0), (0, padded_b - batch)))
    out_t = _run_mlp(xt, prepared, tile=tile, grid=grid,
                     compute_dtype=compute_dtype, out_dtype=out_dtype,
                     vmem_limit=vmem_limit)
    return out_t[:, :batch].T


def simple_model_forward(x, params, prepared=None, *, min_pallas_batch=256,
                         batch_tile=32768, compute_dtype=jnp.float32,
                         out_dtype=None):
    """Dispatch: tiny batches go to plain XLA fusion, large batches to the kernel."""
    if x.shape[0] < min_pallas_batch:
        return reference_forward(x, params)
    if prepared is None:
        prepared = prepare_pallas_params(params)
    return simple_model_forward_pallas(x, prepared, batch_tile=batch_tile,
                                       compute_dtype=compute_dtype,
                                       out_dtype=out_dtype)


def init_params(key):
    """Deterministic init mirroring torch.nn.Linear shapes.

    Math layout: w is [in, out], bias is [1, out] (reference does x @ w + b).
    """
    def linear(key, fan_in, fan_out):
        kw, kb = jax.random.split(key)
        bound = 1.0 / jnp.sqrt(fan_in)
        w = jax.random.uniform(kw, (fan_in, fan_out), jnp.float32, -bound, bound)
        b = jax.random.uniform(kb, (1, fan_out), jnp.float32, -bound, bound)
        return w, b

    k1, k2, k3 = jax.random.split(key, 3)
    w1, b1 = linear(k1, F0, F1)
    w2, b2 = linear(k2, F1, F2)
    w3, b3 = linear(k3, F2, F3)
    return {"w1": w1, "b1": b1, "w2": w2, "b2": b2, "w3": w3, "b3": b3}


def reference_forward(x, p):
    h = jnp.maximum(x @ p["w1"] + p["b1"], 0.0)
    h = jnp.maximum(h @ p["w2"] + p["b2"], 0.0)
    h = jnp.maximum(h @ p["w3"] + p["b3"], 0.0)
    return h


if __name__ == "__main__":
    key = jax.random.PRNGKey(0)
    k_params, k_x = jax.random.split(key)

    params = init_params(k_params)
    prepared = prepare_pallas_params(params)

    # Small but grid-exercising batch: 1000 rows -> 1024 padded lanes -> 2 tiles
    # of 512 (tile capped to keep grid >= 2 for megacore sharding).
    batch = 1000
    x = jax.random.normal(k_x, (batch, F0), jnp.float32)
    ref = reference_forward(x, params)

    # f32 natural-layout path.
    out = jax.block_until_ready(simple_model_forward_pallas(x, prepared))
    assert out.shape == (batch, F3), out.shape
    assert jnp.allclose(out, ref, atol=1e-5, rtol=1e-5), "f32 mismatch vs reference"

    # Transposed-layout path (no wrapper transposes for layout-aware callers).
    out_t = jax.block_until_ready(simple_model_forward_pallas_t(x.T, prepared))
    assert out_t.shape == (F3, batch), out_t.shape
    assert jnp.allclose(out_t.T, ref, atol=1e-5, rtol=1e-5), "transposed-path mismatch"

    # bf16 path: bf16 streamed activations/weights AND bf16 output writeback,
    # with f32 MXU accumulation and f32 bias/ReLU math.
    out_bf16 = jax.block_until_ready(
        simple_model_forward_pallas(x, prepared, compute_dtype=jnp.bfloat16))
    assert out_bf16.dtype == jnp.bfloat16, out_bf16.dtype
    assert jnp.allclose(out_bf16.astype(jnp.float32), ref, atol=1e-1, rtol=1e-1), \
        "bf16 mismatch vs reference"

    # Tiny-batch dispatch: falls back to XLA fusion (kernel overhead not worth it).
    out_small = jax.block_until_ready(simple_model_forward(x[:8], params, prepared))
    assert jnp.allclose(out_small, ref[:8], atol=1e-5, rtol=1e-5), "small-batch mismatch"

    print("KERNEL_OK")
</pallas_src>

<mosaic_0001>
module attributes {stable_mosaic.version = 11 : i64} {
  func.func @mlp_kernel(%arg0: i32, %arg1: memref<5x512xf32, #tpu.memory_space<vmem>>, %arg2: memref<8x5xf32, #tpu.memory_space<vmem>>, %arg3: memref<8x1xf32, #tpu.memory_space<vmem>>, %arg4: memref<4x8xf32, #tpu.memory_space<vmem>>, %arg5: memref<4x1xf32, #tpu.memory_space<vmem>>, %arg6: memref<12x4xf32, #tpu.memory_space<vmem>>, %arg7: memref<12x1xf32, #tpu.memory_space<vmem>>, %arg8: memref<12x512xf32, #tpu.memory_space<vmem>>) attributes {dimension_semantics = [#tpu.dimension_semantics<parallel>], iteration_bounds = array<i64: 2>, scalar_prefetch = 0 : i64, scratch_operands = 0 : i64, tpu.core_type = #tpu.core_type<tc>, window_params = [{transform_indices = @transform_0, window_bounds = array<i64: 5, 512>}, {pipeline_mode = #tpu.pipeline_mode<synchronous>, transform_indices = @transform_1, window_bounds = array<i64: 8, 5>}, {pipeline_mode = #tpu.pipeline_mode<synchronous>, transform_indices = @transform_2, window_bounds = array<i64: 8, 1>}, {pipeline_mode = #tpu.pipeline_mode<synchronous>, transform_indices = @transform_3, window_bounds = array<i64: 4, 8>}, {pipeline_mode = #tpu.pipeline_mode<synchronous>, transform_indices = @transform_4, window_bounds = array<i64: 4, 1>}, {pipeline_mode = #tpu.pipeline_mode<synchronous>, transform_indices = @transform_5, window_bounds = array<i64: 12, 4>}, {pipeline_mode = #tpu.pipeline_mode<synchronous>, transform_indices = @transform_6, window_bounds = array<i64: 12, 1>}, {transform_indices = @transform_7, window_bounds = array<i64: 12, 512>}]} {
    %c0 = arith.constant 0 : index
    %c0_0 = arith.constant 0 : index
    %0 = vector.load %arg2[%c0, %c0_0] : memref<8x5xf32, #tpu.memory_space<vmem>>, vector<8x5xf32>
    %c0_1 = arith.constant 0 : index
    %c0_2 = arith.constant 0 : index
    %1 = vector.load %arg1[%c0_1, %c0_2] : memref<5x512xf32, #tpu.memory_space<vmem>>, vector<5x512xf32>
    %cst = arith.constant dense<0.000000e+00> : vector<8x512xf32>
    %2 = tpu.matmul %0, %1, %cst {dimension_numbers = #tpu.dot_dimension_numbers<[1], [0], [0], [1], [0, 0, 1, 1], [], []>} : vector<8x5xf32>, vector<5x512xf32>, vector<8x512xf32> -> vector<8x512xf32>
    %c0_3 = arith.constant 0 : index
    %c0_4 = arith.constant 0 : index
    %3 = vector.load %arg3[%c0_3, %c0_4] : memref<8x1xf32, #tpu.memory_space<vmem>>, vector<8x1xf32>
    %4 = vector.broadcast %3 : vector<8x1xf32> to vector<8x512xf32>
    %5 = arith.addf %2, %4 : vector<8x512xf32>
    %cst_5 = arith.constant 0.000000e+00 : f32
    %6 = vector.broadcast %cst_5 : f32 to vector<8x512xf32>
    %7 = arith.maximumf %5, %6 : vector<8x512xf32>
    %c0_6 = arith.constant 0 : index
    %c0_7 = arith.constant 0 : index
    %8 = vector.load %arg4[%c0_6, %c0_7] : memref<4x8xf32, #tpu.memory_space<vmem>>, vector<4x8xf32>
    %cst_8 = arith.constant dense<0.000000e+00> : vector<4x512xf32>
    %9 = tpu.matmul %8, %7, %cst_8 {dimension_numbers = #tpu.dot_dimension_numbers<[1], [0], [0], [1], [0, 0, 1, 1], [], []>} : vector<4x8xf32>, vector<8x512xf32>, vector<4x512xf32> -> vector<4x512xf32>
    %c0_9 = arith.constant 0 : index
    %c0_10 = arith.constant 0 : index
    %10 = vector.load %arg5[%c0_9, %c0_10] : memref<4x1xf32, #tpu.memory_space<vmem>>, vector<4x1xf32>
    %11 = vector.broadcast %10 : vector<4x1xf32> to vector<4x512xf32>
    %12 = arith.addf %9, %11 : vector<4x512xf32>
    %cst_11 = arith.constant 0.000000e+00 : f32
    %13 = vector.broadcast %cst_11 : f32 to vector<4x512xf32>
    %14 = arith.maximumf %12, %13 : vector<4x512xf32>
    %c0_12 = arith.constant 0 : index
    %c0_13 = arith.constant 0 : index
    %15 = vector.load %arg6[%c0_12, %c0_13] : memref<12x4xf32, #tpu.memory_space<vmem>>, vector<12x4xf32>
    %cst_14 = arith.constant dense<0.000000e+00> : vector<12x512xf32>
    %16 = tpu.matmul %15, %14, %cst_14 {dimension_numbers = #tpu.dot_dimension_numbers<[1], [0], [0], [1], [0, 0, 1, 1], [], []>} : vector<12x4xf32>, vector<4x512xf32>, vector<12x512xf32> -> vector<12x512xf32>
    %c0_15 = arith.constant 0 : index
    %c0_16 = arith.constant 0 : index
    %17 = vector.load %arg7[%c0_15, %c0_16] : memref<12x1xf32, #tpu.memory_space<vmem>>, vector<12x1xf32>
    %18 = vector.broadcast %17 : vector<12x1xf32> to vector<12x512xf32>
    %19 = arith.addf %16, %18 : vector<12x512xf32>
    %cst_17 = arith.constant 0.000000e+00 : f32
    %20 = vector.broadcast %cst_17 : f32 to vector<12x512xf32>
    %21 = arith.maximumf %19, %20 : vector<12x512xf32>
    %c0_18 = arith.constant 0 : index
    %c0_19 = arith.constant 0 : index
    %22 = vector.load %arg8[%c0_18, %c0_19] : memref<12x512xf32, #tpu.memory_space<vmem>>, vector<12x512xf32>
    tpu.vector_store %arg8[%c0_18, %c0_19], %21 {strides = array<i32>} : memref<12x512xf32, #tpu.memory_space<vmem>>, vector<12x512xf32>,
    return
  }
  func.func @transform_0(%arg0: i32) -> (i32, i32) {
    %c0_i32 = arith.constant 0 : i32
    %c0_i32_0 = arith.constant 0 : i32
    return %c0_i32, %arg0 : i32, i32
  }
  func.func @transform_1(%arg0: i32) -> (i32, i32) {
    %c0_i32 = arith.constant 0 : i32
    %c0_i32_0 = arith.constant 0 : i32
    %c0_i32_1 = arith.constant 0 : i32
    return %c0_i32, %c0_i32_0 : i32, i32
  }
  func.func @transform_2(%arg0: i32) -> (i32, i32) {
    %c0_i32 = arith.constant 0 : i32
    %c0_i32_0 = arith.constant 0 : i32
    %c0_i32_1 = arith.constant 0 : i32
    return %c0_i32, %c0_i32_0 : i32, i32
  }
  func.func @transform_3(%arg0: i32) -> (i32, i32) {
    %c0_i32 = arith.constant 0 : i32
    %c0_i32_0 = arith.constant 0 : i32
    %c0_i32_1 = arith.constant 0 : i32
    return %c0_i32, %c0_i32_0 : i32, i32
  }
  func.func @transform_4(%arg0: i32) -> (i32, i32) {
    %c0_i32 = arith.constant 0 : i32
    %c0_i32_0 = arith.constant 0 : i32
    %c0_i32_1 = arith.constant 0 : i32
    return %c0_i32, %c0_i32_0 : i32, i32
  }
  func.func @transform_5(%arg0: i32) -> (i32, i32) {
    %c0_i32 = arith.constant 0 : i32
    %c0_i32_0 = arith.constant 0 : i32
    %c0_i32_1 = arith.constant 0 : i32
    return %c0_i32, %c0_i32_0 : i32, i32
  }
  func.func @transform_6(%arg0: i32) -> (i32, i32) {
    %c0_i32 = arith.constant 0 : i32
    %c0_i32_0 = arith.constant 0 : i32
    %c0_i32_1 = arith.constant 0 : i32
    return %c0_i32, %c0_i32_0 : i32, i32
  }
  func.func @transform_7(%arg0: i32) -> (i32, i32) {
    %c0_i32 = arith.constant 0 : i32
    %c0_i32_0 = arith.constant 0 : i32
    return %c0_i32, %arg0 : i32, i32
  }
}

</mosaic_0001>

<bundles_post_ra>
// kernel: simple_model_forward_pallas.1
= control target key start
LH: loop header
LB: loop body
LE: loop exit
PB: predicated region body
PF: predicated region fallthrough
CT: control target
= control target key end

     0   :  { %s1026_s24 = smov 0   ;;  %s1028_s25 = smov 0   ;;  %s1126_s0 = inlined_call_operand.vmem [shape: f32[5,1024], index: 0, kind: input, shape index: {}]   ;;  %s1127_s1 = inlined_call_operand.vmem [shape: f32[8,5], index: 1, kind: input, shape index: {}]   ;;  %s1128_s2 = inlined_call_operand.vmem [shape: f32[8,1], index: 2, kind: input, shape index: {}]   ;;  %s1129_s3 = inlined_call_operand.vmem [shape: f32[4,8], index: 3, kind: input, shape index: {}]   ;;  %s1130_s4 = inlined_call_operand.vmem [shape: f32[4,1], index: 4, kind: input, shape index: {}]   ;;  %s1131_s5 = inlined_call_operand.vmem [shape: f32[12,4], index: 5, kind: input, shape index: {}]   ;;  %s1132_s6 = inlined_call_operand.vmem [shape: f32[12,1], index: 6, kind: input, shape index: {}]   ;;  %s1133_s7 = inlined_call_operand.vmem [shape: f32[12,1024], index: 7, kind: output, shape index: {}]  }
   0x1   :  { %s1030_s26 = smov 0  }
   0x2 LB: > { %s1039_s27 = sadd.s32 4294967295, %s982_s26   ;;  %s1041_s28 = sadd.s32 1, %s982_s26   ;;  %s982_s26 = sphi %s1030_s26, %s1137_s26   ;;  %s978_s25 = sphi %s1028_s25, %s1136_s25   ;;  %s974_s24 = sphi %s1026_s24, %s1135_s24  }
   0x3   : > { %s173_s29 = ssub.s32 %s982_s26, %s1041_s28  ;;  %s176_s30 = sadd.s32 1, %s978_s25 }
   0x4   : > { %p174_p0 = scmp.eq.s32.totalorder %s173_s29, 0  ;;  %p186_p1 = scmp.ne.s32.totalorder %s978_s25, %s974_s24 }
   0x5   : > { %p187_p2 = scmp.eq.s32.totalorder %s1039_s27, 1  ;;  %p906_p3 = scmp.ge.s32.totalorder %s982_s26, 1 }
   0x6   : > { %s1049_s8 = scalar_select %p174_p0, %s978_s25, %s176_s30  }
   0x7   : > { %p1051_p4 = por %p187_p2, %p186_p1  ;;  %p238_p5 = scmp.lt.s32.totalorder %s982_s26, 3 }
   0x9   : > { %p239_p6 = pnand %p906_p3, %p238_p5 }
   0xa   : > { %s908_s10 = sshll.u32 (!%p239_p6), %s1039_s27, 2  ;;  %v984_v0 = vmov (!%p239_p6), 0.0   ;;  %v281_v1 = vld [vmem:[%s1128_s2] sm:$0xff] (!%p239_p6)  ;;  %v985_v2 = vmov (!%p239_p6), 0   ;;  %vm291_vm0 = vcmask (!%p239_p6), 1044480   ;;  %vm287_vm1 = vcmask (!%p239_p6), 39936  }
   0xb   : > { %242 = sbr.rel (%p239_p6) target bundleno = 692 (0x2b4), region = 48  ;;  %p270_p7 = scmp.lt.s32.totalorder (!%p239_p6), %s908_s10, 7  ;;  %368 = vmatprep.mubr.f32.mxu0 (!%p239_p6), %v984_v0  ;;  %439 = vmatprep.mubr.f32.mxu1 (!%p239_p6), %v984_v0  ;;  %v451_v3 = vld [vmem:[%s1130_s4] sm:$0xf] (!%p239_p6)  ;;  %vm457_vm2 = vcmask (!%p239_p6), 64512   ;;  %vm628_vm3 = vcmask (!%p239_p6), 1043456  }
   0xc   : > { %958 = vset.pattern.permute.xlu0 (!%p239_p6), %v985_v2  ;;  %959 = vset.pattern.permute.xlu1 (!%p239_p6), %v985_v2  ;;  %v276_v4 = vld [vmem:[%s1127_s1] sm:$0xff] (!%p239_p6)  ;;  %v610_v24 = vld [vmem:[%s1132_s6 + $0x8] sm:$0xf] (!%p239_p6)  ;;  %vm621_vm4 = vcmask (!%p239_p6), 31744   ;;  %s266_s14 = sand.u32 (!%p239_p6), 1, %s974_s24  }
   0xd   : > { %284 = vperm.xlu0 (!%p239_p6), %958, %v281_v1   ;;  %v450_v22 = vld [vmem:[%s1129_s3] sm:$0xf] (!%p239_p6)  ;;  %v608_v39 = vld [vmem:[%s1131_s5 + $0x8] sm:$0xf] (!%p239_p6) }
   0xe   : > { %v609_v23 = vld [vmem:[%s1132_s6] sm:$0xff] (!%p239_p6) }
   0xf   : > { %613 = vperm.xlu1 (!%p239_p6), %959, %v609_v23   ;;  %v607_v38 = vld [vmem:[%s1131_s5] sm:$0xff] (!%p239_p6) }
  0x11   : > { %454 = vperm.xlu0 (!%p239_p6), %958, %v451_v3  }
  0x12   : > { %s1139_s10 = smov (!%p270_p7, %s908_s10), 7  ;;  %s931_s24 = sshll.u32 (%p1051_p4), %s1039_s27, 5 }
  0x13   : > { %s909_s15 = sshll.u32 %s1139_s10, 3  ;;  %618 = vperm.xlu1 %959, %v610_v24   ;;  %s820_s19 = scalar_lea.vmem (%p1051_p4), %s1133_s7, %s931_s24 }
  0x14   : > { %s273_s18 = scalar_lea.vmem %s1126_s0, %s909_s15  ;;  %s907_s15 = sshll.u32 %s266_s14, 6 }
  0x15   : > { %v278_v5 = vld [vmem:[%s273_s18 + $0x8] sm:$0x1f]  ;;  %v280_v6 = vld [vmem:[%s273_s18 + $0x18] sm:$0x1f]  ;;  %v277_v7 = vld [vmem:[%s273_s18] sm:$0x1f] }
  0x16   : > { %910 = vmatprep.subr.msk.mxu0 %vm291_vm0, %v278_v5  ;;  %913 = vmatprep.subr.msk.mxu1 %vm291_vm0, %v280_v6  ;;  %v279_v8 = vld [vmem:[%s273_s18 + $0x10] sm:$0x1f]  ;;  %s1092_s16 = scalar_lea.vmem [#allocation2], %s907_s15 }
  0x17   : > { %911 = vmatpush1.msk.msra.mxu0 %vm291_vm0, %v277_v7  ;;  %914 = vmatpush1.msk.msra.mxu1 %vm291_vm0, %v279_v8 }
  0x18   : > { %912 = vmatmul.mubr.msk.f32.vlgmr.msra.gmra.mrb[0].mxu0 %vm287_vm1, %v276_v4  ;;  %915 = vmatmul.mubr.msk.f32.vlgmr.msra.gmra.mrb[0].mxu1 %vm287_vm1, %v276_v4 }
  0x19   : > { %525 = vmatprep.mubr.f32.mxu0 %v984_v0  ;;  %596 = vmatprep.mubr.f32.mxu1 %v984_v0 }
  0x8c   : > { %v285_v9 = vpop.permute.xlu0 %284 }
  0x8e   : > { %v614_v40 = vpop.permute.xlu1 %613 }
  0x90   : > { %v455_v25 = vpop.permute.xlu0 %454 }
  0x92   : > { %v619_v51 = vpop.permute.xlu1 %618 }
  0xeb   : > { %v370_v10 = vpop.f32.mrb[0].mxu0  ;;  %v441_v11 = vpop.f32.mrb[0].mxu1 }
  0xec   : > { %v371_v12 = vadd.f32 %v370_v10, %v285_v9  ;;  %v442_v13 = vadd.f32 %v441_v11, %v285_v9  ;;  %v372_v14 = vpop.f32.mrb[1].mxu0  ;;  %v443_v15 = vpop.f32.mrb[1].mxu1 }
  0xed   : > { %v373_v16 = vadd.f32 %v372_v14, %v285_v9  ;;  %v444_v17 = vadd.f32 %v443_v15, %v285_v9 }
  0xee   : > { %v446_v20 = vmax.f32 %v371_v12, 0.0  ;;  %v448_v21 = vmax.f32 %v442_v13, 0.0 }
  0xef   : > { %v447_v18 = vmax.f32 %v373_v16, 0.0  ;;  %v449_v19 = vmax.f32 %v444_v17, 0.0 }
  0xf1   : > { %461 = vmatprep.subr.mxu0 %v447_v18  ;;  %532 = vmatprep.subr.mxu1 %v449_v19 }
  0xf2   : > { %462 = vmatpush1.msra.mxu0 %v446_v20  ;;  %533 = vmatpush1.msra.mxu1 %v448_v21 }
  0xf3   : > { %916 = vmatmul.mubr.msk.f32.vlgmr.msra.gmra.mrb[2].mxu0 %vm457_vm2, %v450_v22  ;;  %917 = vmatmul.mubr.msk.f32.vlgmr.msra.gmra.mrb[2].mxu1 %vm457_vm2, %v450_v22 }
  0xf4   : > { %705 = vmatprep.mubr.f32.mxu0 %v984_v0  ;;  %782 = vmatprep.mubr.f32.mxu1 %v984_v0 }
 0x1c6   : > { %v527_v26 = vpop.f32.mrb[2].mxu0  ;;  %v598_v27 = vpop.f32.mrb[2].mxu1 }
 0x1c7   : > { %v528_v28 = vadd.f32 %v527_v26, %v455_v25  ;;  %v599_v29 = vadd.f32 %v598_v27, %v455_v25  ;;  %v529_v30 = vpop.f32.mrb[3].mxu0  ;;  %v600_v31 = vpop.f32.mrb[3].mxu1 }
 0x1c8   : > { %v530_v32 = vadd.f32 %v529_v30, %v455_v25  ;;  %v601_v33 = vadd.f32 %v600_v31, %v455_v25 }
 0x1c9   : > { %v603_v36 = vmax.f32 %v528_v28, 0.0  ;;  %v605_v37 = vmax.f32 %v599_v29, 0.0 }
 0x1ca   : > { %v604_v34 = vmax.f32 %v530_v32, 0.0  ;;  %v606_v35 = vmax.f32 %v601_v33, 0.0 }
 0x1cc   : > { %918 = vmatprep.subr.msk.mxu0 %vm628_vm3, %v604_v34  ;;  %922 = vmatprep.subr.msk.mxu1 %vm628_vm3, %v606_v35 }
 0x1cd   : > { %919 = vmatpush1.msk.msra.mxu0 %vm628_vm3, %v603_v36  ;;  %923 = vmatpush1.msk.msra.mxu1 %vm628_vm3, %v605_v37 }
 0x1ce   : > { %920 = vmatmul.mubr.msk.f32.vlgmr.msra.gmra.mrb[4].mxu0 %vm621_vm4, %v607_v38  ;;  %924 = vmatmul.mubr.msk.f32.vlgmr.msra.gmra.mrb[4].mxu1 %vm621_vm4, %v607_v38 }
 0x1cf   : > { %711 = vmatprep.mubr.f32.mxu0 %v984_v0  ;;  %788 = vmatprep.mubr.f32.mxu1 %v984_v0 }
 0x1d2   : > { %921 = vmatmul.mubr.msk.f32.gmra.mrb[6].mxu0 %vm621_vm4, %v608_v39  ;;  %925 = vmatmul.mubr.msk.f32.gmra.mrb[6].mxu1 %vm621_vm4, %v608_v39 }
 0x2a1   : > { %v707_v41 = vpop.f32.mrb[4].mxu0  ;;  %v784_v42 = vpop.f32.mrb[4].mxu1 }
 0x2a2   : > { %v708_v43 = vadd.f32 %v707_v41, %v614_v40  ;;  %v785_v44 = vadd.f32 %v784_v42, %v614_v40  ;;  %v709_v45 = vpop.f32.mrb[5].mxu0  ;;  %v786_v46 = vpop.f32.mrb[5].mxu1 }
 0x2a3   : > { %v710_v47 = vadd.f32 %v709_v45, %v614_v40  ;;  %v787_v48 = vadd.f32 %v786_v46, %v614_v40 }
 0x2a4   : > { %v795_v49 = vmax.f32 %v708_v43, 0.0  ;;  %v797_v50 = vmax.f32 %v785_v44, 0.0 }
 0x2a5   : > { %v796_v52 = vmax.f32 %v710_v47, 0.0  ;;  %v798_v53 = vmax.f32 %v787_v48, 0.0  ;;  %v713_v54 = vpop.f32.mrb[6].mxu0  ;;  %v790_v55 = vpop.f32.mrb[6].mxu1  ;;  %817 = sbr.rel (!%p1051_p4) target bundleno = 692 (0x2b4), region = 52 }
 0x2a6   : > { %803 = vst [vmem:[%s1092_s16] sm:$0xff] %v795_v49  ;;  %805 = vst [vmem:[%s1092_s16 + $0x10] sm:$0xff] %v797_v50  ;;  %v714_v56 = vadd.f32 %v713_v54, %v619_v51  ;;  %v791_v57 = vadd.f32 %v790_v55, %v619_v51  ;;  %v715_v58 = vpop.f32.mrb[7].mxu0  ;;  %v792_v59 = vpop.f32.mrb[7].mxu1 }
 0x2a7   : > { %804 = vst [vmem:[%s1092_s16 + $0x8] sm:$0xff] %v796_v52  ;;  %806 = vst [vmem:[%s1092_s16 + $0x18] sm:$0xff] %v798_v53  ;;  %v716_v60 = vadd.f32 %v715_v58, %v619_v51  ;;  %v793_v61 = vadd.f32 %v792_v59, %v619_v51 }
 0x2a8   : > { %v799_v62 = vmax.f32 %v714_v56, 0.0  ;;  %v801_v63 = vmax.f32 %v791_v57, 0.0 }
 0x2a9   : > { %v800_v0 = vmax.f32 %v716_v60, 0.0  ;;  %v802_v1 = vmax.f32 %v793_v61, 0.0 }
 0x2aa   : > { %807 = vst [vmem:[%s1092_s16 + $0x20] sm:$0xf] %v799_v62  ;;  %809 = vst [vmem:[%s1092_s16 + $0x30] sm:$0xf] %v801_v63 }
 0x2ab   : > { %808 = vst [vmem:[%s1092_s16 + $0x28] sm:$0xf] %v800_v0  ;;  %810 = vst [vmem:[%s1092_s16 + $0x38] sm:$0xf] %v802_v1 }
 0x2ad   : > { %v833_v2 = vld [vmem:[%s1092_s16] sm:$0xff]  ;;  %v837_v4 = vld [vmem:[%s1092_s16 + $0x10] sm:$0xff] }
 0x2ae   : > { %v835_v3 = vld [vmem:[%s1092_s16 + $0x8] sm:$0xff]  ;;  %v839_v5 = vld [vmem:[%s1092_s16 + $0x18] sm:$0xff]  ;;  %834 = vst [vmem:[%s820_s19] sm:$0xff] %v833_v2  ;;  %838 = vst [vmem:[%s820_s19 + $0x10] sm:$0xff] %v837_v4 }
 0x2af   : > { %836 = vst [vmem:[%s820_s19 + $0x8] sm:$0xff] %v835_v3  ;;  %840 = vst [vmem:[%s820_s19 + $0x18] sm:$0xff] %v839_v5 }
 0x2b1   : > { %v841_v6 = vld [vmem:[%s1092_s16 + $0x20] sm:$0xff]  ;;  %v845_v8 = vld [vmem:[%s1092_s16 + $0x30] sm:$0xff] }
 0x2b2   : > { %v843_v7 = vld [vmem:[%s1092_s16 + $0x28] sm:$0xff]  ;;  %842 = vst [vmem:[%s820_s19 + $0x40] sm:$0xff] %v841_v6  ;;  %v847_v9 = vld [vmem:[%s1092_s16 + $0x38] sm:$0xff]  ;;  %846 = vst [vmem:[%s820_s19 + $0x50] sm:$0xff] %v845_v8 }
 0x2b3   : > { %844 = vst [vmem:[%s820_s19 + $0x48] sm:$0xff] %v843_v7  ;;  %848 = vst [vmem:[%s820_s19 + $0x58] sm:$0xff] %v847_v9 }
 0x2b4 PF: > { %p14_p8 = scmp.ge.s32.totalorder %s1041_s28, 4   ;;  %s1135_s24 = smov %s978_s25 }
 0x2b5   : > { %s1136_s25 = smov %s1049_s8  ;;  %s1137_s26 = smov %s1041_s28 }
 0x2b6   :  { %16 = sbr.rel (!%p14_p8) target bundleno = 2 (0x2), region = 101 }

</bundles_post_ra>
